<compile_context>
chip_gen: v5e
topology: v5e:2x2
jax: 0.10.0
libtpu: 0.0.40
codegen_flags: <defaults>
</compile_context>

<pallas_src>
import jax
import jax.numpy as jnp
import numpy as np
from jax import lax
from jax.experimental import pallas as pl
from jax.experimental.pallas import tpu as pltpu

IMG_SIZE = 16
NUM_CLASSES = 95                      # (95 + 5) * 3 = 300, divisible by 100 -> view(B,100,-1) valid
OUT_FEATURES = (NUM_CLASSES + 5) * 3  # 300
OUT_PAD = 384                         # 3 * 128 -> lane-dense (unmasked) output stores
NUM_PRED = 100
C_IN, C_MID = 3, 32
KH = KW = 3
STRIDE, PAD = 2, 1
KCK = C_IN * KH * KW                  # 27
KCK_PAD = 32                          # sublane-aligned contraction dim


def _yolo_kernel(patches_ref, wc_ref, bc_ref, pool_ref, wf_ref, bf_ref, out_ref):
    # patches_ref: (B*P, 32)  wc_ref: (32, 32)  bc_ref: (1, 32)
    # pool_ref:    (B, B*P)   wf_ref: (32, 384) bf_ref: (1, 384)  out_ref: (B, 384)
    h = jnp.dot(patches_ref[...], wc_ref[...],
                preferred_element_type=jnp.float32)                 # conv-as-matmul (MXU)
    h = jnp.maximum(h + bc_ref[...], 0.0)                           # bias + ReLU (VPU)
    pooled = jnp.dot(pool_ref[...], h,
                     preferred_element_type=jnp.float32)            # global avg pool on MXU -> (B, 32)
    out_ref[...] = (jnp.dot(pooled, wf_ref[...],
                            preferred_element_type=jnp.float32)
                    + bf_ref[...])                                  # fc -> (B, 384)


def prepare_params(w_conv, b_conv, w_fc, b_fc):
    """One-time parameter repack (hoisted out of the per-call path)."""
    wc = jnp.transpose(w_conv.reshape(C_MID, KCK))                        # (27, 32), (C, kh, kw) order
    wc = jnp.pad(wc, ((0, KCK_PAD - KCK), (0, 0)))                        # (32, 32)
    bc = b_conv.reshape(1, C_MID)                                         # (1, 32)
    wf = jnp.pad(jnp.transpose(w_fc), ((0, 0), (0, OUT_PAD - OUT_FEATURES)))  # (32, 384)
    bf = jnp.pad(b_fc, (0, OUT_PAD - OUT_FEATURES)).reshape(1, OUT_PAD)       # (1, 384)
    return wc, bc, wf, bf


@jax.jit
def dummy_yolov4_forward(x, wc, bc, wf, bf):
    B = x.shape[0]
    # Single fused XLA op: NCHW image -> (B, Ho, Wo, C*KH*KW) patches, feature order (C, kh, kw)
    patches = lax.conv_general_dilated_patches(
        x, filter_shape=(KH, KW), window_strides=(STRIDE, STRIDE),
        padding=((PAD, PAD), (PAD, PAD)),
        dimension_numbers=("NCHW", "OIHW", "NHWC"))
    Ho, Wo = patches.shape[1], patches.shape[2]
    P = Ho * Wo
    patches = patches.reshape(B * P, KCK)
    patches = jnp.pad(patches, ((0, 0), (0, KCK_PAD - KCK)))              # K: 27 -> 32 (aligned)

    # Constant (B, B*P) mean-pool matrix: row b has 1/P over columns [b*P, (b+1)*P).
    # B and P are static, so XLA constant-folds this at compile time.
    pool = jnp.repeat(jnp.eye(B, dtype=jnp.float32), P, axis=1) * (1.0 / P)

    out = pl.pallas_call(
        _yolo_kernel,
        out_shape=jax.ShapeDtypeStruct((B, OUT_PAD), jnp.float32),
        in_specs=[pl.BlockSpec(memory_space=pltpu.MemorySpace.VMEM)] * 6,
        out_specs=pl.BlockSpec(memory_space=pltpu.MemorySpace.VMEM),
    )(patches, wc, bc, pool, wf, bf)

    out = out[:, :OUT_FEATURES].reshape(B, NUM_PRED, -1)  # output.view(B, 100, -1) -> (B, 100, 3)
    return [out]                                          # the module returns a list


def _reference(x, w_conv, b_conv, w_fc, b_fc):
    """Pure-JAX reference of the PyTorch forward (for sanity check)."""
    y = lax.conv_general_dilated(
        x, w_conv, window_strides=(STRIDE, STRIDE),
        padding=((PAD, PAD), (PAD, PAD)),
        dimension_numbers=("NCHW", "OIHW", "NCHW"))
    y = jnp.maximum(y + b_conv.reshape(1, C_MID, 1, 1), 0.0)
    pooled = jnp.mean(y, axis=(2, 3))                      # (B, 32)
    out = pooled @ w_fc.T + b_fc                           # (B, 300)
    return out.reshape(x.shape[0], NUM_PRED, -1)


if __name__ == "__main__":
    key = jax.random.PRNGKey(0)
    k1, k2, k3, k4, k5 = jax.random.split(key, 5)

    # Deterministic synthetic parameters (shapes from the module's __init__).
    x = jax.random.normal(k1, (2, C_IN, IMG_SIZE, IMG_SIZE), dtype=jnp.float32)
    w_conv = 0.1 * jax.random.normal(k2, (C_MID, C_IN, KH, KW), dtype=jnp.float32)
    b_conv = 0.1 * jax.random.normal(k3, (C_MID,), dtype=jnp.float32)
    w_fc = 0.1 * jax.random.normal(k4, (OUT_FEATURES, C_MID), dtype=jnp.float32)
    b_fc = 0.1 * jax.random.normal(k5, (OUT_FEATURES,), dtype=jnp.float32)

    wc, bc, wf, bf = prepare_params(w_conv, b_conv, w_fc, b_fc)   # one-time repack

    (out,) = dummy_yolov4_forward(x, wc, bc, wf, bf)
    out = jax.block_until_ready(out)

    assert out.shape == (2, NUM_PRED, 3), out.shape
    ref = _reference(x, w_conv, b_conv, w_fc, b_fc)
    np.testing.assert_allclose(np.asarray(out), np.asarray(ref), rtol=2e-2, atol=2e-2)

    print("KERNEL_OK")
</pallas_src>

<mosaic_0001>
module attributes {stable_mosaic.version = 11 : i64} {
  func.func @_yolo_kernel(%arg0: memref<128x32xf32, #tpu.memory_space<vmem>>, %arg1: memref<32x32xf32, #tpu.memory_space<vmem>>, %arg2: memref<1x32xf32, #tpu.memory_space<vmem>>, %arg3: memref<2x128xf32, #tpu.memory_space<vmem>>, %arg4: memref<32x384xf32, #tpu.memory_space<vmem>>, %arg5: memref<1x384xf32, #tpu.memory_space<vmem>>, %arg6: memref<2x384xf32, #tpu.memory_space<vmem>>) attributes {dimension_semantics = [], scalar_prefetch = 0 : i64, scratch_operands = 0 : i64, tpu.core_type = #tpu.core_type<tc>} {
    %c0 = arith.constant 0 : index
    %c0_0 = arith.constant 0 : index
    %0 = vector.load %arg0[%c0, %c0_0] : memref<128x32xf32, #tpu.memory_space<vmem>>, vector<128x32xf32>
    %c0_1 = arith.constant 0 : index
    %c0_2 = arith.constant 0 : index
    %1 = vector.load %arg1[%c0_1, %c0_2] : memref<32x32xf32, #tpu.memory_space<vmem>>, vector<32x32xf32>
    %cst = arith.constant dense<0.000000e+00> : vector<128x32xf32>
    %2 = tpu.matmul %0, %1, %cst {dimension_numbers = #tpu.dot_dimension_numbers<[1], [0], [0], [1], [0, 0, 1, 1], [], []>} : vector<128x32xf32>, vector<32x32xf32>, vector<128x32xf32> -> vector<128x32xf32>
    %c0_3 = arith.constant 0 : index
    %c0_4 = arith.constant 0 : index
    %3 = vector.load %arg2[%c0_3, %c0_4] : memref<1x32xf32, #tpu.memory_space<vmem>>, vector<1x32xf32>
    %4 = vector.broadcast %3 : vector<1x32xf32> to vector<128x32xf32>
    %5 = arith.addf %2, %4 : vector<128x32xf32>
    %cst_5 = arith.constant 0.000000e+00 : f32
    %6 = vector.broadcast %cst_5 : f32 to vector<128x32xf32>
    %7 = arith.maximumf %5, %6 : vector<128x32xf32>
    %c0_6 = arith.constant 0 : index
    %c0_7 = arith.constant 0 : index
    %8 = vector.load %arg3[%c0_6, %c0_7] : memref<2x128xf32, #tpu.memory_space<vmem>>, vector<2x128xf32>
    %cst_8 = arith.constant dense<0.000000e+00> : vector<2x32xf32>
    %9 = tpu.matmul %8, %7, %cst_8 {dimension_numbers = #tpu.dot_dimension_numbers<[1], [0], [0], [1], [0, 0, 1, 1], [], []>} : vector<2x128xf32>, vector<128x32xf32>, vector<2x32xf32> -> vector<2x32xf32>
    %c0_9 = arith.constant 0 : index
    %c0_10 = arith.constant 0 : index
    %10 = vector.load %arg4[%c0_9, %c0_10] : memref<32x384xf32, #tpu.memory_space<vmem>>, vector<32x384xf32>
    %cst_11 = arith.constant dense<0.000000e+00> : vector<2x384xf32>
    %11 = tpu.matmul %9, %10, %cst_11 {dimension_numbers = #tpu.dot_dimension_numbers<[1], [0], [0], [1], [0, 0, 1, 1], [], []>} : vector<2x32xf32>, vector<32x384xf32>, vector<2x384xf32> -> vector<2x384xf32>
    %c0_12 = arith.constant 0 : index
    %c0_13 = arith.constant 0 : index
    %12 = vector.load %arg5[%c0_12, %c0_13] : memref<1x384xf32, #tpu.memory_space<vmem>>, vector<1x384xf32>
    %13 = vector.broadcast %12 : vector<1x384xf32> to vector<2x384xf32>
    %14 = arith.addf %11, %13 : vector<2x384xf32>
    %c0_14 = arith.constant 0 : index
    %c0_15 = arith.constant 0 : index
    %15 = vector.load %arg6[%c0_14, %c0_15] : memref<2x384xf32, #tpu.memory_space<vmem>>, vector<2x384xf32>
    tpu.vector_store %arg6[%c0_14, %c0_15], %14 {strides = array<i32>} : memref<2x384xf32, #tpu.memory_space<vmem>>, vector<2x384xf32>,
    return
  }
}

</mosaic_0001>

<bundles_post_ra>
// kernel: dummy_yolov4_forward.1
= control target key start
LH: loop header
LB: loop body
LE: loop exit
PB: predicated region body
PF: predicated region fallthrough
CT: control target
= control target key end

     0   :  { %vm47_vm0 = vcmask 261120   ;;  %vm286_vm1 = vcmask 1041408   ;;  %vm288_vm2 = vcmask 1043456   ;;  %s496_s1 = inlined_call_operand.vmem [shape: f32[32,32], index: 1, kind: input, shape index: {}]   ;;  %s497_s0 = inlined_call_operand.vmem [shape: f32[128,32], index: 0, kind: input, shape index: {}]   ;;  %s498_s2 = inlined_call_operand.vmem [shape: f32[1,32], index: 2, kind: input, shape index: {}]   ;;  %s499_s4 = inlined_call_operand.vmem [shape: f32[32,384], index: 4, kind: input, shape index: {}]   ;;  %s500_s3 = inlined_call_operand.vmem [shape: f32[2,128], index: 3, kind: input, shape index: {}]   ;;  %s501_s5 = inlined_call_operand.vmem [shape: f32[1,384], index: 5, kind: input, shape index: {}]   ;;  %s502_s6 = inlined_call_operand.vmem [shape: f32[2,384], index: 6, kind: output, shape index: {}]  }
   0x1   :  { %v42_v0 = vld [vmem:[%s496_s1 + $0x18] sm:$0xff]  ;;  %v41_v1 = vld [vmem:[%s496_s1 + $0x10] sm:$0xff]  ;;  %v40_v2 = vld [vmem:[%s496_s1 + $0x8] sm:$0xff] }
   0x2   :  { %317 = vmatpush.msra.mxu3 %v42_v0  ;;  %316 = vmatpush.msra.mxu2 %v42_v0  ;;  %v39_v3 = vld [vmem:[%s496_s1] sm:$0xff]  ;;  %v32_v5 = vld [vmem:[%s497_s0 + $0x48] sm:$0xff]  ;;  %v33_v9 = vld [vmem:[%s497_s0 + $0x50] sm:$0xff] }
   0x3   :  { %108 = vmatpush.msra.mxu0 %v42_v0  ;;  %315 = vmatpush.msra.mxu1 %v42_v0  ;;  %v35_v4 = vld [vmem:[%s497_s0 + $0x60] sm:$0xff]  ;;  %v28_v7 = vld [vmem:[%s497_s0 + $0x28] sm:$0xff]  ;;  %v29_v11 = vld [vmem:[%s497_s0 + $0x30] sm:$0xff] }
   0x4   :  { %320 = vmatpush.msra.mxu3 %v41_v1  ;;  %319 = vmatpush.msra.mxu2 %v41_v1  ;;  %v23_v6 = vld [vmem:[%s497_s0] sm:$0xff]  ;;  %v36_v8 = vld [vmem:[%s497_s0 + $0x68] sm:$0xff]  ;;  %v37_v12 = vld [vmem:[%s497_s0 + $0x70] sm:$0xff] }
   0x5   :  { %109 = vmatpush.msra.mxu0 %v41_v1  ;;  %318 = vmatpush.msra.mxu1 %v41_v1  ;;  %v24_v10 = vld [vmem:[%s497_s0 + $0x8] sm:$0xff]  ;;  %v34_v13 = vld [vmem:[%s497_s0 + $0x58] sm:$0xff]  ;;  %v25_v14 = vld [vmem:[%s497_s0 + $0x10] sm:$0xff] }
   0x6   :  { %323 = vmatpush.msra.mxu3 %v40_v2  ;;  %322 = vmatpush.msra.mxu2 %v40_v2  ;;  %v30_v15 = vld [vmem:[%s497_s0 + $0x38] sm:$0xff]  ;;  %v31_v18 = vld [vmem:[%s497_s0 + $0x40] sm:$0xff]  ;;  %v208_v38 = vld [vmem:[%s499_s4 + $0x50] sm:$0xff] }
   0x7   :  { %110 = vmatpush.msra.mxu0 %v40_v2  ;;  %321 = vmatpush.msra.mxu1 %v40_v2  ;;  %v38_v16 = vld [vmem:[%s497_s0 + $0x78] sm:$0xff]  ;;  %v27_v19 = vld [vmem:[%s497_s0 + $0x20] sm:$0xff]  ;;  %v207_v39 = vld [vmem:[%s499_s4 + $0x48] sm:$0xff] }
   0x8   :  { %326 = vmatpush.msra.mxu3 %v39_v3  ;;  %325 = vmatpush.msra.mxu2 %v39_v3  ;;  %v26_v17 = vld [vmem:[%s497_s0 + $0x18] sm:$0xff]  ;;  %v327_v31 = vld [vmem:[%s498_s2] ss:$0 sm:$0xff]  ;;  %v204_v43 = vld [vmem:[%s499_s4 + $0x30] sm:$0xff] }
   0x9   :  { %308 = vmatmul.msk.f32.vlgmr.msra.gmra.mxu3 %vm47_vm0, %v35_v4  ;;  %305 = vmatmul.msk.f32.vlgmr.msra.gmra.mxu2 %vm47_vm0, %v32_v5  ;;  %v205_v44 = vld [vmem:[%s499_s4 + $0x38] sm:$0xff]  ;;  %v202_v46 = vld [vmem:[%s499_s4 + $0x20] sm:$0xff] }
   0xa   :  { %111 = vmatpush.msra.mxu0 %v39_v3  ;;  %324 = vmatpush.msra.mxu1 %v39_v3  ;;  %v201_v48 = vld [vmem:[%s499_s4 + $0x18] sm:$0xff]  ;;  %v198_v53 = vld [vmem:[%s499_s4] sm:$0xff] }
   0xb   :  { %296 = vmatmul.msk.f32.vlgmr.msra.gmra.mxu0 %vm47_vm0, %v23_v6  ;;  %301 = vmatmul.msk.f32.vlgmr.msra.gmra.mxu1 %vm47_vm0, %v28_v7 }
   0xc   :  { %253 = vmatpush.msrb.mxu3 %v208_v38  ;;  %233 = vmatpush.msrb.mxu2 %v207_v39 }
   0xe   :  { %254 = vmatpush.msrb.mxu3 %v205_v44  ;;  %234 = vmatpush.msrb.mxu2 %v204_v43 }
  0x10   :  { %255 = vmatpush.msrb.mxu3 %v202_v46  ;;  %235 = vmatpush.msrb.mxu2 %v201_v48 }
  0x11   :  { %309 = vmatmul.msk.f32.gmra.mxu3 %vm47_vm0, %v36_v8  ;;  %306 = vmatmul.msk.f32.gmra.mxu2 %vm47_vm0, %v33_v9 }
  0x12   :  { %236 = vmatpush.msrb.mxu2 %v198_v53 }
  0x13   :  { %297 = vmatmul.msk.f32.gmra.mxu0 %vm47_vm0, %v24_v10  ;;  %302 = vmatmul.msk.f32.gmra.mxu1 %vm47_vm0, %v29_v11 }
  0x19   :  { %310 = vmatmul.msk.f32.gmra.mxu3 %vm47_vm0, %v37_v12  ;;  %307 = vmatmul.msk.f32.gmra.mxu2 %vm47_vm0, %v34_v13  ;;  %v177_v12 = vld [vmem:[%s500_s3] sm:$0x3]  ;;  %v199_v13 = vld [vmem:[%s499_s4 + $0x8] sm:$0xff] }
  0x1a   :  { %256 = vmatpush.msrb.mxu3 %v199_v13 }
  0x1b   :  { %298 = vmatmul.msk.f32.gmra.mxu0 %vm47_vm0, %v25_v14  ;;  %303 = vmatmul.msk.f32.gmra.mxu1 %vm47_vm0, %v30_v15  ;;  %v209_v14 = vld [vmem:[%s499_s4 + $0x58] sm:$0xff]  ;;  %v206_v15 = vld [vmem:[%s499_s4 + $0x40] sm:$0xff] }
  0x1c   :  { %273 = vmatpush.msra.mxu2 %v209_v14 }
  0x1e   :  { %274 = vmatpush.msra.mxu2 %v206_v15 }
  0x21   :  { %311 = vmatmul.msk.f32.gmra.mxu3 %vm47_vm0, %v38_v16  ;;  %v203_v16 = vld [vmem:[%s499_s4 + $0x28] sm:$0xff] }
  0x22   :  { %275 = vmatpush.msra.mxu2 %v203_v16 }
  0x23   :  { %299 = vmatmul.msk.f32.gmra.mxu0 %vm47_vm0, %v26_v17  ;;  %304 = vmatmul.msk.f32.gmra.mxu1 %vm47_vm0, %v31_v18  ;;  %v200_v17 = vld [vmem:[%s499_s4 + $0x10] sm:$0xff] }
  0x24   :  { %276 = vmatpush.msra.mxu2 %v200_v17 }
  0x2b   :  { %300 = vmatmul.msk.f32.gmra.mxu0 %vm47_vm0, %v27_v19  ;;  %v210_v19 = vld [vmem:[%s501_s5] sm:$0x7] }
  0x88   :  { %v439_v21 = vpop.f32.mrf.mxu0  ;;  %v128_v22 = vpop.f32.mrf.mxu1 }
  0x89   :  { %v129_v62 = vadd.f32 %v327_v31, %v128_v22  ;;  %v114_v8 = vadd.f32 %v327_v31, %v439_v21  ;;  %v213_v21 = vperm.slane %v210_v19, 1 }
  0x8b   :  { %v166_v2 = vmax.f32 %v129_v62, 0.0  ;;  %v161_v11 = vmax.f32 %v114_v8, 0.0 }
  0x8c   :  { %v149_v20 = vpop.f32.mrf.mxu3  ;;  %v140_v23 = vpop.f32.mrf.mxu2 }
  0x8d   :  { %v150_v40 = vadd.f32 %v327_v31, %v149_v20  ;;  %v141_v54 = vadd.f32 %v327_v31, %v140_v23 }
  0x8f   :  { %v173_v50 = vmax.f32 %v150_v40, 0.0  ;;  %v170_v57 = vmax.f32 %v141_v54, 0.0 }
  0x90   :  { %v441_v25 = vpop.f32.mrf.mxu0  ;;  %v131_v26 = vpop.f32.mrf.mxu1 }
  0x91   :  { %v132_v61 = vadd.f32 %v327_v31, %v131_v26  ;;  %v117_v6 = vadd.f32 %v327_v31, %v441_v25  ;;  %v212_v25 = vperm.slane %v210_v19, 0 }
  0x93   :  { %v167_v1 = vmax.f32 %v132_v61, 0.0  ;;  %v162_v10 = vmax.f32 %v117_v6, 0.0 }
  0x94   :  { %v152_v24 = vpop.f32.mrf.mxu3  ;;  %v143_v28 = vpop.f32.mrf.mxu2 }
  0x95   :  { %v153_v36 = vadd.f32 %v327_v31, %v152_v24  ;;  %v144_v51 = vadd.f32 %v327_v31, %v143_v28  ;;  %v214_v24 = vperm.slane %v210_v19, 2 }
  0x97   :  { %v174_v47 = vmax.f32 %v153_v36, 0.0  ;;  %v171_v56 = vmax.f32 %v144_v51, 0.0 }
  0x98   :  { %v119_v29 = vpop.f32.mrf.mxu0  ;;  %v134_v30 = vpop.f32.mrf.mxu1 }
  0x99   :  { %v135_v58 = vadd.f32 %v327_v31, %v134_v30  ;;  %v120_v5 = vadd.f32 %v327_v31, %v119_v29 }
  0x9b   :  { %v168_v63 = vmax.f32 %v135_v58, 0.0  ;;  %v163_v9 = vmax.f32 %v120_v5, 0.0 }
  0x9c   :  { %v155_v27 = vpop.f32.mrf.mxu3  ;;  %v146_v35 = vpop.f32.mrf.mxu2 }
  0x9d   :  { %v156_v33 = vadd.f32 %v327_v31, %v155_v27  ;;  %v147_v42 = vadd.f32 %v327_v31, %v146_v35 }
  0x9f   :  { %v175_v41 = vmax.f32 %v156_v33, 0.0  ;;  %v172_v52 = vmax.f32 %v147_v42, 0.0 }
  0xa0   :  { %v122_v45 = vpop.f32.mrf.mxu0  ;;  %v137_v49 = vpop.f32.mrf.mxu1 }
  0xa1   :  { %v138_v55 = vadd.f32 %v327_v31, %v137_v49  ;;  %v123_v3 = vadd.f32 %v327_v31, %v122_v45 }
  0xa3   :  { %v169_v59 = vmax.f32 %v138_v55, 0.0  ;;  %v164_v7 = vmax.f32 %v123_v3, 0.0 }
  0xa4   :  { %v158_v32 = vpop.f32.mrf.mxu3 }
  0xa5   :  { %v159_v34 = vadd.f32 %v327_v31, %v158_v32 }
  0xa7   :  { %v176_v37 = vmax.f32 %v159_v34, 0.0 }
  0xa8   :  { %v125_v60 = vpop.f32.mrf.mxu0 }
  0xa9   :  { %178 = vmatpush.msrb.mxu1 %v176_v37  ;;  %v126_v0 = vadd.f32 %v327_v31, %v125_v60 }
  0xab   :  { %179 = vmatpush.msrb.mxu1 %v175_v41  ;;  %v165_v4 = vmax.f32 %v126_v0, 0.0 }
  0xad   :  { %180 = vmatpush.msrb.mxu1 %v174_v47 }
  0xaf   :  { %181 = vmatpush.msrb.mxu1 %v173_v50 }
  0xb1   :  { %182 = vmatpush.msrb.mxu1 %v172_v52 }
  0xb3   :  { %183 = vmatpush.msrb.mxu1 %v171_v56 }
  0xb5   :  { %184 = vmatpush.msrb.mxu1 %v170_v57 }
  0xb7   :  { %185 = vmatpush.msrb.mxu1 %v169_v59 }
  0xb9   :  { %186 = vmatpush.msrb.mxu1 %v168_v63 }
  0xbb   :  { %187 = vmatpush.msrb.mxu1 %v167_v1 }
  0xbd   :  { %188 = vmatpush.msrb.mxu1 %v166_v2 }
  0xbf   :  { %189 = vmatpush.msrb.mxu1 %v165_v4 }
  0xc1   :  { %190 = vmatpush.msrb.mxu1 %v164_v7 }
  0xc3   :  { %191 = vmatpush.msrb.mxu1 %v163_v9 }
  0xc5   :  { %192 = vmatpush.msrb.mxu1 %v162_v10 }
  0xc7   :  { %193 = vmatpush.msrb.mxu1 %v161_v11 }
  0xc8   :  { %194 = vmatmul.f32.vlgmr.msrb.gmra.mxu1 %v177_v12 }
 0x145   :  { %v195_v18 = vpop.f32.mrf.mxu1 }
 0x146   :  { %312 = vmatmul.msk.f32.vlgmr.msrb.gmra.mxu2 %vm47_vm0, %v195_v18  ;;  %313 = vmatmul.msk.f32.vlgmr.msrb.gmra.mxu3 %vm47_vm0, %v195_v18 }
 0x14e   :  { %314 = vmatmul.msk.f32.vlgmr.msra.gmra.mxu2 %vm47_vm0, %v195_v18 }
 0x1c9   :  { %v238_v20 = vpop.f32.mrf.mxu2  ;;  %v258_v22 = vpop.f32.mrf.mxu3 }
 0x1ca   :  { %v259_v23 = vadd.f32 %v258_v22, %v213_v21  ;;  %v239_v29 = vadd.f32 %v238_v20, %v212_v25 }
 0x1cc   :  { %v284_v26 = vrot.slane %v259_v23, 6 }
 0x1ce   :  { %v287_v31 = vsel %vm286_vm1, %v239_v29, %v284_v26 }
 0x1d1   :  { %v278_v27 = vpop.f32.mrf.mxu2 }
 0x1d2   :  { %v279_v28 = vadd.f32 %v278_v27, %v214_v24 }
 0x1d4   :  { %v285_v30 = vrot.slane %v279_v28, 4 }
 0x1d6   :  { %v289_v32 = vsel %vm288_vm2, %v287_v31, %v285_v30 }
 0x1d7   :  { %291 = vst [vmem:[%s502_s6] sm:$0x3f] %v289_v32 }

</bundles_post_ra>
